<compile_context>
chip_gen: v6e
topology: v6e:2x2x1
jax: 0.10.0
libtpu: 0.0.40
codegen_flags: <defaults>
</compile_context>

<pallas_src>
import jax
import jax.numpy as jnp
import numpy as np
from jax.experimental import pallas as pl
from jax.experimental.pallas import tpu as pltpu

_ACC_ROWS = 8  # full-sublane f32 partial accumulators / output slabs


def _uni_reduce_kernel(adjcol_ref, uni_ref, out_ref, neigh_acc, usum_acc):
    """One grid step reduces one (tile_nu, D) tile of uni_feat.

    adjcol_ref : (tile_nu, 1)  column adj[:, cur_sub_idx] (zero-padded rows)
    uni_ref    : (tile_nu, D)  uni_feat tile (zero-padded rows)
    out_ref    : (2*8, D)      rows 0:8 = neighbor partials, 8:16 = uni-sum partials
    neigh_acc  : (8, D) f32 VMEM scratch
    usum_acc   : (8, D) f32 VMEM scratch
    """
    i = pl.program_id(1)

    @pl.when(i == 0)
    def _init():
        neigh_acc[...] = jnp.zeros_like(neigh_acc)
        usum_acc[...] = jnp.zeros_like(usum_acc)

    tile, d = uni_ref.shape
    uni = uni_ref[...].astype(jnp.float32)                       # (tile, D)
    # NaN-safe select (no multiplicative masking).
    nbr = jnp.where(adjcol_ref[...] > 0, uni, 0.0)               # (tile, D)

    # Pure VPU vreg adds: collapse groups of 8 sublanes into the (8, D) partials.
    usum_acc[...] += jnp.sum(uni.reshape(tile // 8, 8, d), axis=0)
    neigh_acc[...] += jnp.sum(nbr.reshape(tile // 8, 8, d), axis=0)

    @pl.when(i == pl.num_programs(1) - 1)
    def _finalize():
        out_ref[0:_ACC_ROWS, :] = neigh_acc[...]
        out_ref[_ACC_ROWS:2 * _ACC_ROWS, :] = usum_acc[...]


def _plan_tiles(n_uni, d, itemsize):
    """Generation-aware tile size + VMEM limit (double-buffered uni + adj col)."""
    try:
        vmem_bytes = int(pltpu.get_tpu_info().vmem_capacity_bytes)
    except Exception:
        vmem_bytes = 64 * 1024 * 1024            # conservative (v7x per-TC)
    stream_budget = max(2 * 1024 * 1024, vmem_bytes // 16)
    row_bytes = itemsize * (d + 1)               # uni row + adj-column element
    tile_nu = (stream_budget // (2 * row_bytes)) // 8 * 8
    tile_nu = max(8, tile_nu)
    n_uni8 = -(-n_uni // 8) * 8
    tile_nu = min(tile_nu, n_uni8)
    vmem_limit = int(min(64 * 1024 * 1024, vmem_bytes // 2))
    return int(tile_nu), vmem_limit


def feature_processing(adj, cur_sub_idx, uni_feat, sub_feat, original_sub_feat,
                       tile_nu=None):
    """Pallas implementation of FeatureProcessing.forward. Returns (5*D,)."""
    n_uni, _ = adj.shape
    d = uni_feat.shape[1]
    out_dtype = uni_feat.dtype
    idx = jnp.asarray(cur_sub_idx, dtype=jnp.int32)

    auto_tile, vmem_limit = _plan_tiles(n_uni, d, int(uni_feat.dtype.itemsize))
    if tile_nu is None:
        tile_nu = auto_tile
    n_uni8 = -(-n_uni // 8) * 8
    tile_nu = max(8, min(int(tile_nu), n_uni8) // 8 * 8)

    n_tiles = -(-n_uni // tile_nu)
    num_splits = 2 if n_tiles >= 2 else 1        # feeds both v7x TensorCores
    tiles_per_split = -(-n_tiles // num_splits)
    n_uni_pad = num_splits * tiles_per_split * tile_nu

    # Only the needed adj column enters the kernel (review item #1).
    adj_col = jax.lax.dynamic_slice_in_dim(adj, idx, 1, axis=1)   # (n_uni, 1)

    pad_rows = n_uni_pad - n_uni
    if pad_rows:
        uni_p = jnp.pad(uni_feat, ((0, pad_rows), (0, 0)))
        adj_col_p = jnp.pad(adj_col, ((0, pad_rows), (0, 0)))
    else:
        uni_p, adj_col_p = uni_feat, adj_col

    out_rows = num_splits * 2 * _ACC_ROWS
    bytes_accessed = (int(uni_feat.dtype.itemsize) * n_uni_pad * d
                      + int(adj.dtype.itemsize) * n_uni_pad
                      + 4 * out_rows * d)

    part = pl.pallas_call(
        _uni_reduce_kernel,
        out_shape=jax.ShapeDtypeStruct((out_rows, d), jnp.float32),
        grid_spec=pltpu.PrefetchScalarGridSpec(
            num_scalar_prefetch=0,
            grid=(num_splits, tiles_per_split),
            in_specs=[
                pl.BlockSpec((tile_nu, 1),
                             lambda c, i: (c * tiles_per_split + i, 0)),
                pl.BlockSpec((tile_nu, d),
                             lambda c, i: (c * tiles_per_split + i, 0)),
            ],
            out_specs=pl.BlockSpec((2 * _ACC_ROWS, d), lambda c, i: (c, 0)),
            scratch_shapes=[pltpu.VMEM((_ACC_ROWS, d), jnp.float32),
                            pltpu.VMEM((_ACC_ROWS, d), jnp.float32)],
        ),
        compiler_params=pltpu.CompilerParams(
            dimension_semantics=("parallel", "arbitrary"),
            vmem_limit_bytes=vmem_limit,
        ),
        cost_estimate=pl.CostEstimate(
            flops=3 * n_uni_pad * d,
            transcendentals=0,
            bytes_accessed=bytes_accessed,
        ),
    )(adj_col_p, uni_p)

    # Final combine: sum the per-split (8, D) partials once (cheap, exact f32).
    part = part.reshape(num_splits, 2, _ACC_ROWS, d)
    neighbor_uni_feat = jnp.sum(part[:, 0], axis=(0, 1)).astype(out_dtype)
    uni_feat_sum = jnp.sum(part[:, 1], axis=(0, 1)).astype(out_dtype)

    # Cheap one-pass sub_feat terms stay in the wrapper (perf review).
    current_subset = jnp.take(sub_feat, idx, axis=0).astype(out_dtype)
    sub_feat_sum = jnp.sum(sub_feat.astype(jnp.float32), axis=0).astype(out_dtype)

    return jnp.concatenate([
        original_sub_feat.reshape(-1).astype(out_dtype),
        current_subset.reshape(-1),
        neighbor_uni_feat,
        uni_feat_sum,
        sub_feat_sum,
    ])


def feature_processing_ref(adj, cur_sub_idx, uni_feat, sub_feat,
                           original_sub_feat):
    """Pure-JAX reference of the PyTorch forward."""
    current_subset = sub_feat[cur_sub_idx, :]
    mask = (adj[:, cur_sub_idx] > 0)[:, None]
    neighbor_uni_feat = jnp.sum(jnp.where(mask, uni_feat, 0), axis=0)
    uni_feat_sum = jnp.sum(uni_feat, axis=0)
    sub_feat_sum = jnp.sum(sub_feat, axis=0)
    return jnp.concatenate(
        (original_sub_feat, current_subset, neighbor_uni_feat,
         uni_feat_sum, sub_feat_sum))


if __name__ == "__main__":
    key = jax.random.PRNGKey(0)
    k1, k2, k3, k4, k5, k6, k7, k8 = jax.random.split(key, 8)

    # --- case 1: small shapes, single tile, single split ---------------------
    N_UNI, N_SUB, D = 16, 8, 128
    CUR_SUB_IDX = 3

    adj = jax.random.normal(k1, (N_UNI, N_SUB), dtype=jnp.float32)
    uni_feat = jax.random.normal(k2, (N_UNI, D), dtype=jnp.float32)
    sub_feat = jax.random.normal(k3, (N_SUB, D), dtype=jnp.float32)
    original_sub_feat = jax.random.normal(k4, (D,), dtype=jnp.float32)

    out = feature_processing(adj, CUR_SUB_IDX, uni_feat, sub_feat,
                             original_sub_feat)
    out = jax.block_until_ready(out)
    ref = feature_processing_ref(adj, CUR_SUB_IDX, uni_feat, sub_feat,
                                 original_sub_feat)
    np.testing.assert_allclose(np.asarray(out), np.asarray(ref),
                               rtol=1e-5, atol=1e-5)

    # --- case 2: multi-tile grid with zero-padding (20 -> 32 rows), 2-way
    #             split of the N_uni reduction, cur_sub_idx in the 2nd 128-col
    #             half of adj -------------------------------------------------
    N_UNI2, N_SUB2, D2 = 20, 256, 128
    CUR_SUB_IDX2 = 200

    adj2 = jax.random.normal(k5, (N_UNI2, N_SUB2), dtype=jnp.float32)
    uni_feat2 = jax.random.normal(k6, (N_UNI2, D2), dtype=jnp.float32)
    sub_feat2 = jax.random.normal(k7, (N_SUB2, D2), dtype=jnp.float32)
    original_sub_feat2 = jax.random.normal(k8, (D2,), dtype=jnp.float32)

    out2 = feature_processing(adj2, CUR_SUB_IDX2, uni_feat2, sub_feat2,
                              original_sub_feat2, tile_nu=8)  # force multi-tile
    out2 = jax.block_until_ready(out2)
    ref2 = feature_processing_ref(adj2, CUR_SUB_IDX2, uni_feat2, sub_feat2,
                                  original_sub_feat2)
    np.testing.assert_allclose(np.asarray(out2), np.asarray(ref2),
                               rtol=1e-5, atol=1e-5)

    print("KERNEL_OK")
</pallas_src>

<mosaic_0001>
module attributes {stable_mosaic.version = 11 : i64} {
  func.func @_uni_reduce_kernel(%arg0: i32, %arg1: i32, %arg2: memref<16x1xf32, #tpu.memory_space<vmem>>, %arg3: memref<16x128xf32, #tpu.memory_space<vmem>>, %arg4: memref<16x128xf32, #tpu.memory_space<vmem>>, %arg5: memref<8x128xf32, #tpu.memory_space<vmem>>, %arg6: memref<8x128xf32, #tpu.memory_space<vmem>>) attributes {dimension_semantics = [#tpu.dimension_semantics<parallel>, #tpu.dimension_semantics<arbitrary>], iteration_bounds = array<i64: 1, 1>, scalar_prefetch = 0 : i64, scratch_operands = 2 : i64, tpu.core_type = #tpu.core_type<tc>, window_params = [{transform_indices = @transform_0, window_bounds = array<i64: 16, 1>}, {transform_indices = @transform_1, window_bounds = array<i64: 16, 128>}, {transform_indices = @transform_2, window_bounds = array<i64: 16, 128>}]} {
    %c0_i32 = arith.constant 0 : i32
    %0 = arith.cmpi eq, %arg1, %c0_i32 : i32
    %1 = arith.extui %0 : i1 to i32
    %c0_i32_0 = arith.constant 0 : i32
    %2 = arith.cmpi ne, %1, %c0_i32_0 : i32
    scf.if %2 {
      %cst_17 = arith.constant 0.000000e+00 : f32
      %24 = vector.broadcast %cst_17 : f32 to vector<8x128xf32>
      %c0_18 = arith.constant 0 : index
      %c0_19 = arith.constant 0 : index
      %25 = vector.load %arg5[%c0_18, %c0_19] : memref<8x128xf32, #tpu.memory_space<vmem>>, vector<8x128xf32>
      tpu.vector_store %arg5[%c0_18, %c0_19], %24 {strides = array<i32>} : memref<8x128xf32, #tpu.memory_space<vmem>>, vector<8x128xf32>,
      %cst_20 = arith.constant 0.000000e+00 : f32
      %26 = vector.broadcast %cst_20 : f32 to vector<8x128xf32>
      %c0_21 = arith.constant 0 : index
      %c0_22 = arith.constant 0 : index
      %27 = vector.load %arg6[%c0_21, %c0_22] : memref<8x128xf32, #tpu.memory_space<vmem>>, vector<8x128xf32>
      tpu.vector_store %arg6[%c0_21, %c0_22], %26 {strides = array<i32>} : memref<8x128xf32, #tpu.memory_space<vmem>>, vector<8x128xf32>,
    } else {
    }
    %c0 = arith.constant 0 : index
    %c0_1 = arith.constant 0 : index
    %3 = vector.load %arg3[%c0, %c0_1] : memref<16x128xf32, #tpu.memory_space<vmem>>, vector<16x128xf32>
    %c0_2 = arith.constant 0 : index
    %c0_3 = arith.constant 0 : index
    %4 = vector.load %arg2[%c0_2, %c0_3] : memref<16x1xf32, #tpu.memory_space<vmem>>, vector<16x1xf32>
    %cst = arith.constant 0.000000e+00 : f32
    %5 = vector.broadcast %cst : f32 to vector<16x1xf32>
    %6 = arith.cmpf ogt, %4, %5 : vector<16x1xf32>
    %cst_4 = arith.constant 0.000000e+00 : f32
    %7 = vector.shape_cast %6 : vector<16x1xi1> to vector<16x1xi1>
    %8 = vector.broadcast %7 : vector<16x1xi1> to vector<16x128xi1>
    %9 = vector.broadcast %cst_4 : f32 to vector<16x128xf32>
    %10 = arith.select %8, %3, %9 : vector<16x128xi1>, vector<16x128xf32>
    %c0_5 = arith.constant 0 : index
    %c0_6 = arith.constant 0 : index
    %11 = vector.load %arg6[%c0_5, %c0_6] : memref<8x128xf32, #tpu.memory_space<vmem>>, vector<8x128xf32>
    %12 = vector.shape_cast %3 : vector<16x128xf32> to vector<2x8x128xf32>
    %cst_7 = arith.constant dense<0.000000e+00> : vector<8x128xf32>
    %13 = vector.multi_reduction <add>, %12, %cst_7 [0] : vector<2x8x128xf32> to vector<8x128xf32>
    %14 = arith.addf %11, %13 : vector<8x128xf32>
    %c0_8 = arith.constant 0 : index
    %c0_9 = arith.constant 0 : index
    %15 = vector.load %arg6[%c0_8, %c0_9] : memref<8x128xf32, #tpu.memory_space<vmem>>, vector<8x128xf32>
    tpu.vector_store %arg6[%c0_8, %c0_9], %14 {strides = array<i32>} : memref<8x128xf32, #tpu.memory_space<vmem>>, vector<8x128xf32>,
    %c0_10 = arith.constant 0 : index
    %c0_11 = arith.constant 0 : index
    %16 = vector.load %arg5[%c0_10, %c0_11] : memref<8x128xf32, #tpu.memory_space<vmem>>, vector<8x128xf32>
    %17 = vector.shape_cast %10 : vector<16x128xf32> to vector<2x8x128xf32>
    %cst_12 = arith.constant dense<0.000000e+00> : vector<8x128xf32>
    %18 = vector.multi_reduction <add>, %17, %cst_12 [0] : vector<2x8x128xf32> to vector<8x128xf32>
    %19 = arith.addf %16, %18 : vector<8x128xf32>
    %c0_13 = arith.constant 0 : index
    %c0_14 = arith.constant 0 : index
    %20 = vector.load %arg5[%c0_13, %c0_14] : memref<8x128xf32, #tpu.memory_space<vmem>>, vector<8x128xf32>
    tpu.vector_store %arg5[%c0_13, %c0_14], %19 {strides = array<i32>} : memref<8x128xf32, #tpu.memory_space<vmem>>, vector<8x128xf32>,
    %c0_i32_15 = arith.constant 0 : i32
    %21 = arith.cmpi eq, %arg1, %c0_i32_15 : i32
    %22 = arith.extui %21 : i1 to i32
    %c0_i32_16 = arith.constant 0 : i32
    %23 = arith.cmpi ne, %22, %c0_i32_16 : i32
    scf.if %23 {
      %c0_17 = arith.constant 0 : index
      %c0_18 = arith.constant 0 : index
      %24 = vector.load %arg5[%c0_17, %c0_18] : memref<8x128xf32, #tpu.memory_space<vmem>>, vector<8x128xf32>
      %c0_19 = arith.constant 0 : index
      %c0_20 = arith.constant 0 : index
      %25 = vector.load %arg4[%c0_19, %c0_20] : memref<16x128xf32, #tpu.memory_space<vmem>>, vector<8x128xf32>
      tpu.vector_store %arg4[%c0_19, %c0_20], %24 {strides = array<i32>} : memref<16x128xf32, #tpu.memory_space<vmem>>, vector<8x128xf32>,
      %c0_21 = arith.constant 0 : index
      %c0_22 = arith.constant 0 : index
      %26 = vector.load %arg6[%c0_21, %c0_22] : memref<8x128xf32, #tpu.memory_space<vmem>>, vector<8x128xf32>
      %c8 = arith.constant 8 : index
      %c0_23 = arith.constant 0 : index
      %27 = vector.load %arg4[%c8, %c0_23] : memref<16x128xf32, #tpu.memory_space<vmem>>, vector<8x128xf32>
      tpu.vector_store %arg4[%c8, %c0_23], %26 {strides = array<i32>} : memref<16x128xf32, #tpu.memory_space<vmem>>, vector<8x128xf32>,
    } else {
    }
    return
  }
  func.func @transform_0(%arg0: i32, %arg1: i32) -> (i32, i32) {
    %c1_i32 = arith.constant 1 : i32
    %0 = arith.muli %arg0, %c1_i32 : i32
    %1 = arith.addi %0, %arg1 : i32
    %c0_i32 = arith.constant 0 : i32
    %c0_i32_0 = arith.constant 0 : i32
    return %1, %c0_i32 : i32, i32
  }
  func.func @transform_1(%arg0: i32, %arg1: i32) -> (i32, i32) {
    %c1_i32 = arith.constant 1 : i32
    %0 = arith.muli %arg0, %c1_i32 : i32
    %1 = arith.addi %0, %arg1 : i32
    %c0_i32 = arith.constant 0 : i32
    %c0_i32_0 = arith.constant 0 : i32
    return %1, %c0_i32 : i32, i32
  }
  func.func @transform_2(%arg0: i32, %arg1: i32) -> (i32, i32) {
    %c0_i32 = arith.constant 0 : i32
    %c0_i32_0 = arith.constant 0 : i32
    return %arg0, %c0_i32 : i32, i32
  }
}

</mosaic_0001>

<bundles_post_ra>
// kernel: tpu_custom_call.1
= control target key start
LH: loop header
LB: loop body
LE: loop exit
PB: predicated region body
PF: predicated region fallthrough
CT: control target
= control target key end

     0   :  { %v150_v2 = vmov 0   ;;  %s184_s0 = inlined_call_operand.vmem [shape: f32[16,1], index: 0, kind: input, shape index: {}]   ;;  %s185_s1 = inlined_call_operand.vmem [shape: f32[16,128], index: 1, kind: input, shape index: {}]   ;;  %s186_s2 = inlined_call_operand.hbm [shape: f32[16,128], index: 2, kind: output, shape index: {}]  }
   0x1   :  { %v64_v0 = vld [vmem:[%s184_s0] sm:$0xff]  ;;  %v65_v1 = vld [vmem:[%s184_s0 + $0x8] sm:$0xff]  ;;  %127 = vset.pattern.permute.xlu0 %v150_v2 }
   0x2   :  { %vm66_vm0 = vcmp.gt.f32.partialorder %v64_v0, 0.0  ;;  %vm67_vm1 = vcmp.gt.f32.partialorder %v65_v1, 0.0 }
   0x3   :  { %7 = vsyncpa [#allocation5], 0  ;;  %v68_v3 = vsel %vm66_vm0, 1, %v150_v2  ;;  %v63_v4 = vld [vmem:[%s185_s1 + $0x8] sm:$0xff]  ;;  %v62_v5 = vld [vmem:[%s185_s1] sm:$0xff]  ;;  %v69_v6 = vsel %vm67_vm1, 1, %v150_v2 }
   0x4   :  { %71 = vperm.xlu0 %127, %v68_v3   ;;  %v81_v7 = vadd.f32 %v63_v4, %v62_v5  ;;  %s151_s0 = smov [#allocation4]  }
   0x5   :  { %s100_s17 = sshll.u32 %s151_s0, 4  ;;  %s101_s17 = int_to_ptr.vmem [resolvable:$true] %s100_s17 }
   0x6   :  { %94 = vst [vmem:[#allocation4 + $0x8] sm:$0xff] %v81_v7  ;;  %s128_s18 = scalar_lea.vmem %s101_s17, 256  ;;  %p133_p1 = scmp.lt.s32.totalorder %s101_s17, %s101_s17 }
   0x7   :  { %p129_p0 = scmp.ne.s32.totalorder %s101_s17, %s128_s18  ;;  %p134_p2 = scmp.lt.s32.totalorder %s128_s18, %s128_s18 }
   0x8   :  { %74 = vperm.xlu0 %127, %v69_v6  }
   0x9   :  { %p135_p3 = por %p134_p2, %p133_p1 }
   0xb   :  { %p136_p4 = pnand %p135_p3, %p129_p0 }
  0x7f   :  { %v72_v8 = vpop.permute.xlu0 %71 }
  0x80   :  { %vm76_vm2 = vcmp.eq.s32.totalorder %v72_v8, 1 }
  0x81   :  { %v78_v10 = vsel %vm76_vm2, %v62_v5, 0.0 }
  0x83   :  { %v75_v9 = vpop.permute.xlu0 %74 }
  0x84   :  { %vm77_vm3 = vcmp.eq.s32.totalorder %v75_v9, 1 }
  0x85   :  { %v79_v11 = vsel %vm77_vm3, %v63_v4, 0.0 }
  0x86   :  { %v85_v12 = vadd.f32 %v79_v11, %v78_v10 }
  0x88   :  { %92 = vst [vmem:[#allocation4] sm:$0xff] %v85_v12 }
  0x89   :  { %139 = shalt.err (!%p136_p4)
}
  0x8a   :  { %s152_s1 = smov 128   ;;  %s153_s19 = smov 8  }
  0x8b   :  { %106 = dma.vmem_to_hbm [thread:$0]  %s101_s17, 256, %s186_s2, [#allocation5], %s152_s1, %s152_s1, %s153_s19  }
  0x8c   :  { %148 = dma.done.wait [#allocation5], 256  }
  0x8d   :  { %149 = vsyncadd [#allocation5], 4294967040 }
  0x8e   :  { %110 = vsyncpa [#allocation5], 1 }

</bundles_post_ra>
